<compile_context>
chip_gen: v7x
topology: tpu7x:2x2x1
jax: 0.10.0
libtpu: 0.0.40
codegen_flags: <defaults>
</compile_context>

<pallas_src>
import functools

import jax
import jax.numpy as jnp
from jax import lax
from jax.experimental import pallas as pl
from jax.experimental.pallas import tpu as pltpu


def _round_up(x, m):
    return ((x + m - 1) // m) * m


# ---------------------------------------------------------------------------
# Pallas kernel: tiled pruned linear  y = x @ (w * mask).T + bias  (+ ReLU)
#   grid = (M/tm, N/tn, K/tk), reduction axis last.
# ---------------------------------------------------------------------------
def _pruned_linear_kernel(x_ref, w_ref, m_ref, b_ref, o_ref, acc_ref, *,
                          apply_relu):
    kk = pl.program_id(2)

    @pl.when(kk == 0)
    def _():
        acc_ref[...] = jnp.zeros_like(acc_ref)

    # Mask applied in f32 on the VPU (v5e has no bf16 VPU); mask is streamed
    # as int8 to cut its HBM traffic 4x vs an f32 mask.
    w = jnp.where(m_ref[...] != 0, w_ref[...], 0.0)

    # bf16 at the MXU boundary, f32 accumulation (v6e/v7x fast MXU path).
    # Contraction over the last dim of BOTH operands -> no weight transpose.
    acc_ref[...] += lax.dot_general(
        x_ref[...].astype(jnp.bfloat16),
        w.astype(jnp.bfloat16),
        dimension_numbers=(((1,), (1,)), ((), ())),
        preferred_element_type=jnp.float32,
    )

    @pl.when(kk == pl.num_programs(2) - 1)
    def _():
        y = acc_ref[...] + b_ref[...]          # bias only on the final K step
        if apply_relu:
            y = jnp.maximum(y, 0.0)
        o_ref[...] = y.astype(o_ref.dtype)


def weight_popup_linear(x, weights, mask, bias, *, apply_relu=False,
                        tm=128, tn=256, tk=512):
    """x: (B, in) f32, weights: (out, in) f32, mask: (out, in) int8,
    bias: (out,) f32 -> (B, out) f32."""
    B, K = x.shape
    N, K2 = weights.shape
    assert K == K2 and mask.shape == weights.shape and bias.shape == (N,)

    # Clamp tile sizes to the (padded) problem; N/K tiles are multiples of 128
    # (lane-dense stores / MXU geometry), M tile is a multiple of 8.
    tm = min(tm, _round_up(B, 8))
    tn = min(tn, _round_up(N, 128))
    tk = min(tk, _round_up(K, 128))
    Mp, Np, Kp = _round_up(B, tm), _round_up(N, tn), _round_up(K, tk)

    xp = jnp.pad(x, ((0, Mp - B), (0, Kp - K))) if (Mp, Kp) != (B, K) else x
    wp = jnp.pad(weights, ((0, Np - N), (0, Kp - K))) if (Np, Kp) != (N, K) else weights
    mp = jnp.pad(mask, ((0, Np - N), (0, Kp - K))) if (Np, Kp) != (N, K) else mask
    bp = (jnp.pad(bias, (0, Np - N)) if Np != N else bias).reshape(1, Np)

    grid = (Mp // tm, Np // tn, Kp // tk)

    out = pl.pallas_call(
        functools.partial(_pruned_linear_kernel, apply_relu=apply_relu),
        out_shape=jax.ShapeDtypeStruct((Mp, Np), jnp.float32),
        grid_spec=pltpu.PrefetchScalarGridSpec(
            num_scalar_prefetch=0,
            grid=grid,
            in_specs=[
                pl.BlockSpec((tm, tk), lambda i, j, kk: (i, kk)),   # x
                pl.BlockSpec((tn, tk), lambda i, j, kk: (j, kk)),   # weights
                pl.BlockSpec((tn, tk), lambda i, j, kk: (j, kk)),   # mask (int8)
                pl.BlockSpec((1, tn), lambda i, j, kk: (0, j)),     # bias
            ],
            out_specs=pl.BlockSpec((tm, tn), lambda i, j, kk: (i, j)),
            scratch_shapes=[pltpu.VMEM((tm, tn), jnp.float32)],
        ),
        compiler_params=pltpu.CompilerParams(
            dimension_semantics=("parallel", "parallel", "arbitrary"),
            vmem_limit_bytes=48 * 1024 * 1024,   # fits v7x's 64 MiB VMEM budget
        ),
    )(xp, wp, mp, bp)

    return out[:B, :N]


# ---------------------------------------------------------------------------
# GetWeightSubset equivalent (parameter-setup glue, plain JAX):
# keep the top-k fraction of |scores| -> int8 0/1 mask.
# ---------------------------------------------------------------------------
def get_weight_subset(scores_abs, k):
    flat = scores_abs.reshape(-1)
    numel = flat.size
    j = int((1.0 - k) * numel)          # bottom j entries -> 0 (matches PyTorch)
    n_keep = numel - j
    if n_keep <= 0:
        return jnp.zeros(scores_abs.shape, dtype=jnp.int8)
    if n_keep >= numel:
        return jnp.ones(scores_abs.shape, dtype=jnp.int8)
    # top_k instead of a full argsort; tie-breaking may differ from torch's
    # stable sort when |scores| have equal magnitudes (mask size is identical).
    _, keep_idx = lax.top_k(flat, n_keep)
    mask_flat = jnp.zeros((numel,), dtype=jnp.int8).at[keep_idx].set(1)
    return mask_flat.reshape(scores_abs.shape)


# ---------------------------------------------------------------------------
# Full forward pass of WeightPopupLayer / WeightPopupNetwork
# ---------------------------------------------------------------------------
def weight_popup_layer_forward(x, weights, bias, scores, k=0.5, *, apply_relu=False):
    mask = get_weight_subset(jnp.abs(scores), k)
    # TODO(synk): for pure inference with static weights/scores, precompute
    # weights*mask once in JAX and drop the mask operand from the kernel
    # (~2x fewer HBM bytes); the fused path here keeps training semantics.
    return weight_popup_linear(x, weights, mask, bias, apply_relu=apply_relu)


def weight_popup_network_forward(x, params, k=0.5):
    x = x.reshape(x.shape[0], -1)                          # x.view(x.size(0), -1)
    h = weight_popup_layer_forward(x, params["fc1"]["w"], params["fc1"]["b"],
                                   params["fc1"]["scores"], k, apply_relu=True)
    h = weight_popup_layer_forward(h, params["fc2"]["w"], params["fc2"]["b"],
                                   params["fc2"]["scores"], k, apply_relu=True)
    return weight_popup_layer_forward(h, params["fc3"]["w"], params["fc3"]["b"],
                                      params["fc3"]["scores"], k, apply_relu=False)


if __name__ == "__main__":
    # Small shapes consistent with the module (padded internally to TPU tiles).
    # For production, batch >= 128 per tile amortizes MXU fill + launch cost.
    batch, input_dim, hidden_dim, output_dim = 16, 64, 96, 32
    k = 0.5

    key = jax.random.PRNGKey(0)
    kx, kw1, kw2, kw3, ks1, ks2, ks3 = jax.random.split(key, 7)
    x = jax.random.normal(kx, (batch, input_dim), dtype=jnp.float32)

    def init_layer(kw, ks, in_f, out_f):
        # kaiming_normal_(fan_in, relu) -> std = sqrt(2 / fan_in); bias zeros.
        w = jax.random.normal(kw, (out_f, in_f), jnp.float32) * jnp.sqrt(2.0 / in_f)
        b = jnp.zeros((out_f,), jnp.float32)
        # Module inits scores to ones (fully tied); use deterministic random
        # scores to simulate a trained popup state with an unambiguous top-k.
        s = jax.random.normal(ks, (out_f, in_f), jnp.float32)
        return {"w": w, "b": b, "scores": s}

    params = {
        "fc1": init_layer(kw1, ks1, input_dim, hidden_dim),
        "fc2": init_layer(kw2, ks2, hidden_dim, hidden_dim),
        "fc3": init_layer(kw3, ks3, hidden_dim, output_dim),
    }

    out = weight_popup_network_forward(x, params, k=k)
    out = jax.block_until_ready(out)
    assert out.shape == (batch, output_dim)

    # --- reference checks -------------------------------------------------
    def ref_layer(h, p, relu, bf16):
        m = get_weight_subset(jnp.abs(p["scores"]), k).astype(jnp.float32)
        w = p["w"] * m
        if bf16:   # matches the kernel's bf16-input / f32-accumulate matmul
            y = jnp.dot(h.astype(jnp.bfloat16), w.astype(jnp.bfloat16).T,
                        preferred_element_type=jnp.float32) + p["b"]
        else:      # exact f32 module semantics
            y = h @ w.T + p["b"]
        return jnp.maximum(y, 0.0) if relu else y

    def ref_net(xin, bf16):
        h = ref_layer(xin, params["fc1"], True, bf16)
        h = ref_layer(h, params["fc2"], True, bf16)
        return ref_layer(h, params["fc3"], False, bf16)

    ref_bf16 = ref_net(x, bf16=True)    # numerics-matched reference (tight)
    ref_f32 = ref_net(x, bf16=False)    # module-exact f32 reference (loose)
    assert jnp.allclose(out, ref_bf16, atol=2e-3, rtol=2e-3)
    assert jnp.allclose(out, ref_f32, atol=5e-2, rtol=5e-2)

    print("KERNEL_OK")
</pallas_src>

<mosaic_0001>
module attributes {stable_mosaic.version = 11 : i64} {
  func.func @_pruned_linear_kernel(%arg0: i32, %arg1: i32, %arg2: i32, %arg3: memref<16x128xf32, #tpu.memory_space<vmem>>, %arg4: memref<128x128xf32, #tpu.memory_space<vmem>>, %arg5: memref<128x128xi8, #tpu.memory_space<vmem>>, %arg6: memref<1x128xf32, #tpu.memory_space<vmem>>, %arg7: memref<16x128xf32, #tpu.memory_space<vmem>>, %arg8: memref<16x128xf32, #tpu.memory_space<vmem>>) attributes {dimension_semantics = [#tpu.dimension_semantics<parallel>, #tpu.dimension_semantics<parallel>, #tpu.dimension_semantics<arbitrary>], iteration_bounds = array<i64: 1, 1, 1>, scalar_prefetch = 0 : i64, scratch_operands = 1 : i64, tpu.core_type = #tpu.core_type<tc>, window_params = [{transform_indices = @transform_0, window_bounds = array<i64: 16, 128>}, {transform_indices = @transform_1, window_bounds = array<i64: 128, 128>}, {transform_indices = @transform_2, window_bounds = array<i64: 128, 128>}, {transform_indices = @transform_3, window_bounds = array<i64: 1, 128>}, {transform_indices = @transform_4, window_bounds = array<i64: 16, 128>}]} {
    %c0_i32 = arith.constant 0 : i32
    %0 = arith.cmpi eq, %arg2, %c0_i32 : i32
    %1 = arith.extui %0 : i1 to i32
    %c0_i32_0 = arith.constant 0 : i32
    %2 = arith.cmpi ne, %1, %c0_i32_0 : i32
    scf.if %2 {
      %cst_13 = arith.constant 0.000000e+00 : f32
      %19 = vector.broadcast %cst_13 : f32 to vector<16x128xf32>
      %c0_14 = arith.constant 0 : index
      %c0_15 = arith.constant 0 : index
      %20 = vector.load %arg8[%c0_14, %c0_15] : memref<16x128xf32, #tpu.memory_space<vmem>>, vector<16x128xf32>
      tpu.vector_store %arg8[%c0_14, %c0_15], %19 {strides = array<i32>} : memref<16x128xf32, #tpu.memory_space<vmem>>, vector<16x128xf32>,
    } else {
    }
    %c0 = arith.constant 0 : index
    %c0_1 = arith.constant 0 : index
    %3 = vector.load %arg5[%c0, %c0_1] : memref<128x128xi8, #tpu.memory_space<vmem>>, vector<128x128xi8>
    %c0_i8 = arith.constant 0 : i8
    %4 = vector.broadcast %c0_i8 : i8 to vector<128x128xi8>
    %5 = arith.cmpi ne, %3, %4 : vector<128x128xi8>
    %c0_2 = arith.constant 0 : index
    %c0_3 = arith.constant 0 : index
    %6 = vector.load %arg4[%c0_2, %c0_3] : memref<128x128xf32, #tpu.memory_space<vmem>>, vector<128x128xf32>
    %cst = arith.constant 0.000000e+00 : f32
    %7 = vector.broadcast %cst : f32 to vector<128x128xf32>
    %8 = arith.select %5, %6, %7 : vector<128x128xi1>, vector<128x128xf32>
    %c0_4 = arith.constant 0 : index
    %c0_5 = arith.constant 0 : index
    %9 = vector.load %arg8[%c0_4, %c0_5] : memref<16x128xf32, #tpu.memory_space<vmem>>, vector<16x128xf32>
    %c0_6 = arith.constant 0 : index
    %c0_7 = arith.constant 0 : index
    %10 = vector.load %arg3[%c0_6, %c0_7] : memref<16x128xf32, #tpu.memory_space<vmem>>, vector<16x128xf32>
    %11 = arith.truncf %10 : vector<16x128xf32> to vector<16x128xbf16>
    %12 = arith.truncf %8 : vector<128x128xf32> to vector<128x128xbf16>
    %cst_8 = arith.constant dense<0.000000e+00> : vector<16x128xf32>
    %13 = tpu.matmul %11, %12, %cst_8 {dimension_numbers = #tpu.dot_dimension_numbers<[1], [1], [0], [0], [0, 0, 1, 0], [], []>} : vector<16x128xbf16>, vector<128x128xbf16>, vector<16x128xf32> -> vector<16x128xf32>
    %14 = arith.addf %9, %13 : vector<16x128xf32>
    %c0_9 = arith.constant 0 : index
    %c0_10 = arith.constant 0 : index
    %15 = vector.load %arg8[%c0_9, %c0_10] : memref<16x128xf32, #tpu.memory_space<vmem>>, vector<16x128xf32>
    tpu.vector_store %arg8[%c0_9, %c0_10], %14 {strides = array<i32>} : memref<16x128xf32, #tpu.memory_space<vmem>>, vector<16x128xf32>,
    %c0_i32_11 = arith.constant 0 : i32
    %16 = arith.cmpi eq, %arg2, %c0_i32_11 : i32
    %17 = arith.extui %16 : i1 to i32
    %c0_i32_12 = arith.constant 0 : i32
    %18 = arith.cmpi ne, %17, %c0_i32_12 : i32
    scf.if %18 {
      %c0_13 = arith.constant 0 : index
      %c0_14 = arith.constant 0 : index
      %19 = vector.load %arg8[%c0_13, %c0_14] : memref<16x128xf32, #tpu.memory_space<vmem>>, vector<16x128xf32>
      %c0_15 = arith.constant 0 : index
      %c0_16 = arith.constant 0 : index
      %20 = vector.load %arg6[%c0_15, %c0_16] : memref<1x128xf32, #tpu.memory_space<vmem>>, vector<1x128xf32>
      %21 = vector.broadcast %20 : vector<1x128xf32> to vector<16x128xf32>
      %22 = arith.addf %19, %21 : vector<16x128xf32>
      %cst_17 = arith.constant 0.000000e+00 : f32
      %23 = vector.broadcast %cst_17 : f32 to vector<16x128xf32>
      %24 = arith.maximumf %22, %23 : vector<16x128xf32>
      %c0_18 = arith.constant 0 : index
      %c0_19 = arith.constant 0 : index
      %25 = vector.load %arg7[%c0_18, %c0_19] : memref<16x128xf32, #tpu.memory_space<vmem>>, vector<16x128xf32>
      tpu.vector_store %arg7[%c0_18, %c0_19], %24 {strides = array<i32>} : memref<16x128xf32, #tpu.memory_space<vmem>>, vector<16x128xf32>,
    } else {
    }
    return
  }
  func.func @transform_0(%arg0: i32, %arg1: i32, %arg2: i32) -> (i32, i32) {
    %c0_i32 = arith.constant 0 : i32
    return %arg0, %arg2 : i32, i32
  }
  func.func @transform_1(%arg0: i32, %arg1: i32, %arg2: i32) -> (i32, i32) {
    %c0_i32 = arith.constant 0 : i32
    return %arg1, %arg2 : i32, i32
  }
  func.func @transform_2(%arg0: i32, %arg1: i32, %arg2: i32) -> (i32, i32) {
    %c0_i32 = arith.constant 0 : i32
    return %arg1, %arg2 : i32, i32
  }
  func.func @transform_3(%arg0: i32, %arg1: i32, %arg2: i32) -> (i32, i32) {
    %c0_i32 = arith.constant 0 : i32
    %c0_i32_0 = arith.constant 0 : i32
    return %c0_i32, %arg1 : i32, i32
  }
  func.func @transform_4(%arg0: i32, %arg1: i32, %arg2: i32) -> (i32, i32) {
    %c0_i32 = arith.constant 0 : i32
    return %arg0, %arg1 : i32, i32
  }
}

</mosaic_0001>

<bundles_post_ra>
// kernel: tpu_custom_call.1
= control target key start
LH: loop header
LB: loop body
LE: loop exit
PB: predicated region body
PF: predicated region fallthrough
CT: control target
= control target key end

     0   :  { %9 = vsyncpa [#allocation4], 0  ;;  %s608_s0 = inlined_call_operand.hbm [shape: f32[16,128], index: 0, kind: input, shape index: {}]   ;;  %s609_s1 = inlined_call_operand.hbm [shape: f32[128,128], index: 1, kind: input, shape index: {}]   ;;  %s610_s2 = inlined_call_operand.hbm [shape: s8[128,128], index: 2, kind: input, shape index: {}]   ;;  %s611_s3 = inlined_call_operand.vmem [shape: f32[1,128], index: 3, kind: input, shape index: {}]   ;;  %s612_s4 = inlined_call_operand.hbm [shape: f32[16,128], index: 4, kind: output, shape index: {}]  }
   0x1   :  { %10 = vsyncpa [#allocation7], 0 }
   0x2   :  { %11 = vsyncpa [#allocation5], 0  ;;  %s475_s15 = smov [#allocation6]   ;;  %s476_s17 = smov [#allocation3]  }
   0x3   :  { %s29_s16 = sshll.u32 %s475_s15, 4  ;;  %s17_s18 = sshll.u32 %s476_s17, 4  ;;  %s30_s16 = int_to_ptr.vmem [resolvable:$true] %s29_s16  ;;  %s509_s18 = int_to_ptr.vmem [resolvable:$true] %s17_s18 }
   0x4   :  { %s381_s21 = scalar_lea.hbm %s609_s1, 2048 }
   0x5   :  { %p382_p0 = scmp.ne.s32.totalorder %s609_s1, %s381_s21  ;;  %p385_p1 = scmp.lt.u32.totalorder %s381_s21, %s609_s1 }
   0x7   :  { %p387_p2 = pnand %p385_p1, %p382_p0 }
   0x9   :  { %390 = shalt.err (!%p387_p2)
}
   0xa   :  { %s391_s26 = scalar_lea.vmem %s30_s16, 2048  ;;  %p396_p4 = scmp.lt.s32.totalorder %s30_s16, %s30_s16 }
   0xb   :  { %p392_p3 = scmp.ne.s32.totalorder %s30_s16, %s391_s26  ;;  %p397_p5 = scmp.lt.s32.totalorder %s391_s26, %s391_s26 }
   0xd   :  { %p398_p6 = por %p397_p5, %p396_p4 }
   0xf   :  { %p399_p7 = pnand %p398_p6, %p392_p3 }
  0x11   :  { %402 = shalt.err (!%p399_p7)
}
  0x12   :  { %s477_s27 = smov 128   ;;  %s478_s28 = smov 8  }
  0x13   :  { %35 = dma.hbm_to_vmem [thread:$0]  %s609_s1, 2048, %s30_s16, [#allocation7], %s477_s27, %s477_s27, %s478_s28  }
  0x14   :  { %s403_s7 = scalar_lea.hbm %s608_s0, 256 }
  0x15   :  { %p404_p8 = scmp.ne.s32.totalorder %s608_s0, %s403_s7  ;;  %p407_p9 = scmp.lt.u32.totalorder %s403_s7, %s608_s0 }
  0x17   :  { %p409_p10 = pnand %p407_p9, %p404_p8 }
  0x19   :  { %412 = shalt.err (!%p409_p10)
}
  0x1a   :  { %s413_s12 = scalar_lea.vmem %s509_s18, 256  ;;  %p418_p12 = scmp.lt.s32.totalorder %s509_s18, %s509_s18 }
  0x1b   :  { %p414_p11 = scmp.ne.s32.totalorder %s509_s18, %s413_s12  ;;  %p419_p13 = scmp.lt.s32.totalorder %s413_s12, %s413_s12 }
  0x1d   :  { %p420_p0 = por %p419_p13, %p418_p12 }
  0x1f   :  { %p421_p1 = pnand %p420_p0, %p414_p11 }
  0x21   :  { %424 = shalt.err (!%p421_p1)
}
  0x22   :  { %23 = dma.hbm_to_vmem [thread:$0]  %s608_s0, 256, %s509_s18, [#allocation4], %s477_s27, %s477_s27, %s478_s28  }
  0x23   :  { %s479_s14 = smov [#allocation8]   ;;  %s425_s19 = scalar_lea.hbm %s610_s2, 512 }
  0x24   :  { %s41_s15 = sshll.u32 %s479_s14, 4  ;;  %p426_p2 = scmp.ne.s32.totalorder %s610_s2, %s425_s19  ;;  %s42_s15 = int_to_ptr.vmem [resolvable:$true] %s41_s15 }
  0x25   :  { %p429_p3 = scmp.lt.u32.totalorder %s425_s19, %s610_s2 }
  0x27   :  { %p431_p4 = pnand %p429_p3, %p426_p2 }
  0x29   :  { %434 = shalt.err (!%p431_p4)
}
  0x2a   :  { %s435_s24 = scalar_lea.vmem %s42_s15, 512  ;;  %p440_p6 = scmp.lt.s32.totalorder %s42_s15, %s42_s15 }
  0x2b   :  { %p436_p5 = scmp.ne.s32.totalorder %s42_s15, %s435_s24  ;;  %p441_p7 = scmp.lt.s32.totalorder %s435_s24, %s435_s24 }
  0x2d   :  { %p442_p8 = por %p441_p7, %p440_p6 }
  0x2f   :  { %p443_p9 = pnand %p442_p8, %p436_p5 }
  0x31   :  { %446 = shalt.err (!%p443_p9)
}
  0x32   :  { %47 = dma.hbm_to_vmem [thread:$0]  %s610_s2, 512, %s42_s15, [#allocation7], %s477_s27, %s477_s27, %s478_s28  }
  0x33   :  { %469 = dma.done.wait [#allocation4], 256  }
  0x34   :  { %470 = vsyncadd [#allocation4], 4294967040 }
  0x35   :  { %471 = dma.done.wait [#allocation7], 2560  }
  0x36   :  { %472 = vsyncadd [#allocation7], 4294964736  ;;  %v480_v0 = vmov 0.0   ;;  %vm481_vm0 = vmmov 0   ;;  %v68_v1 = vld [vmem:[#allocation8] sm:$0xff]  ;;  %v69_v2 = vld [vmem:[#allocation8 + $0x8] sm:$0xff] }
  0x37   :  { %352 = vmatprep.subr.bf16.mxu0 %v480_v0  ;;  %368 = vmatprep.mubr.msk.bf16.mxu0 %vm481_vm0, %v480_v0  ;;  %vm72_vm1 = vnez %v68_v1  ;;  %v482_v3 = vmov 0   ;;  %vm73_vm2 = vnez %v69_v2  ;;  %v76_v10 = vld [vmem:[#allocation6] sm:$0xff]  ;;  %v77_v11 = vld [vmem:[#allocation6 + $0x8] sm:$0xff]  ;;  %v70_v26 = vld [vmem:[#allocation8 + $0x10] sm:$0xff]  ;;  %s483_s26 = smov [#allocation9]  }
  0x38   :  { %v92_v4 = vsel %vm72_vm1, 16843009, %v482_v3  ;;  %v93_v9 = vsel %vm73_vm2, 16843009, %v482_v3  ;;  %v319_v22 = vpack.c.bf16 %v77_v11, %v76_v10  ;;  %vm74_vm7 = vnez %v70_v26  ;;  %v78_v38 = vld [vmem:[#allocation6 + $0x10] sm:$0xff]  ;;  %v79_v39 = vld [vmem:[#allocation6 + $0x18] sm:$0xff] }
  0x39   :  { %v96_v5 = vunpack.c.0.s8 %v92_v4  ;;  %v97_v6 = vunpack.c.1.s8 %v92_v4  ;;  %v98_v7 = vunpack.c.2.s8 %v92_v4  ;;  %v99_v8 = vunpack.c.3.s8 %v92_v4  ;;  %v80_v52 = vld [vmem:[#allocation6 + $0x20] sm:$0xff]  ;;  %v81_v53 = vld [vmem:[#allocation6 + $0x28] sm:$0xff]  ;;  %v71_v59 = vld [vmem:[#allocation8 + $0x18] sm:$0xff]  ;;  %s305_s29 = sshll.u32 %s483_s26, 4  ;;  %s306_s29 = int_to_ptr.vmem [resolvable:$true] %s305_s29 }
  0x3a   :  { %v100_v16 = vunpack.c.0.s8 %v93_v9  ;;  %v101_v17 = vunpack.c.1.s8 %v93_v9  ;;  %v102_v25 = vunpack.c.2.s8 %v93_v9  ;;  %v103_v30 = vunpack.c.3.s8 %v93_v9  ;;  %v82_v4 = vld [vmem:[#allocation6 + $0x30] sm:$0xff]  ;;  %s447_s30 = scalar_lea.vmem %s306_s29, 256  ;;  %p452_p11 = scmp.lt.s32.totalorder %s306_s29, %s306_s29 }
  0x3b   :  { %v112_v12 = vpack.c.b16 %v96_v5, %v96_v5  ;;  %v114_v13 = vpack.c.b16 %v97_v6, %v97_v6  ;;  %v116_v14 = vpack.c.b16 %v98_v7, %v98_v7  ;;  %v118_v15 = vpack.c.b16 %v99_v8, %v99_v8  ;;  %v83_v5 = vld [vmem:[#allocation6 + $0x38] sm:$0xff]  ;;  %p448_p10 = scmp.ne.s32.totalorder %s306_s29, %s447_s30  ;;  %p453_p12 = scmp.lt.s32.totalorder %s447_s30, %s447_s30 }
  0x3c   :  { %v120_v23 = vpack.c.b16 %v100_v16, %v100_v16  ;;  %v122_v24 = vpack.c.b16 %v101_v17, %v101_v17  ;;  %v124_v40 = vpack.c.b16 %v102_v25, %v102_v25  ;;  %v126_v41 = vpack.c.b16 %v103_v30, %v103_v30 }
  0x3d   :  { %v113_v18 = vpack.c.b8 %v112_v12, %v112_v12  ;;  %v115_v19 = vpack.c.b8 %v114_v13, %v114_v13  ;;  %v117_v20 = vpack.c.b8 %v116_v14, %v116_v14  ;;  %v119_v21 = vpack.c.b8 %v118_v15, %v118_v15  ;;  %p454_p13 = por %p453_p12, %p452_p11 }
  0x3e   :  { %v121_v34 = vpack.c.b8 %v120_v23, %v120_v23  ;;  %v123_v35 = vpack.c.b8 %v122_v24, %v122_v24  ;;  %v94_v42 = vsel %vm74_vm7, 16843009, %v482_v3  ;;  %v322_v43 = vpack.c.bf16 %v79_v39, %v78_v38 }
  0x3f   :  { %vm144_vm3 = vnez %v113_v18  ;;  %vm145_vm4 = vnez %v115_v19  ;;  %vm146_vm5 = vnez %v117_v20  ;;  %vm147_vm6 = vnez %v119_v21  ;;  %v84_v18 = vld [vmem:[#allocation6 + $0x40] sm:$0xff]  ;;  %v85_v19 = vld [vmem:[#allocation6 + $0x48] sm:$0xff]  ;;  %p455_p0 = pnand %p454_p13, %p448_p10 }
  0x40   :  { %v160_v27 = vsel %vm144_vm3, 16843009, %v482_v3  ;;  %v161_v28 = vsel %vm145_vm4, 16843009, %v482_v3  ;;  %v162_v29 = vsel %vm146_vm5, 16843009, %v482_v3  ;;  %vm148_vm11 = vnez %v121_v34 }
  0x41   :  { %v176_v31 = vunpack.c.0.s8 %v160_v27  ;;  %v177_v32 = vunpack.c.0.s8 %v161_v28  ;;  %v163_v33 = vsel %vm147_vm6, 16843009, %v482_v3  ;;  %v178_v36 = vunpack.c.0.s8 %v162_v29  ;;  %v87_v34 = vld [vmem:[#allocation6 + $0x58] sm:$0xff] }
  0x42   :  { %v179_v37 = vunpack.c.0.s8 %v163_v33  ;;  %vm149_vm12 = vnez %v123_v35  ;;  %v164_v44 = vsel %vm148_vm11, 16843009, %v482_v3  ;;  %v125_v46 = vpack.c.b8 %v124_v40, %v124_v40  ;;  %v86_v33 = vld [vmem:[#allocation6 + $0x50] sm:$0xff] }
  0x43   :  { %vm192_vm8 = vcmp.ne.s32.totalorder %v176_v31, 0  ;;  %vm193_vm9 = vcmp.ne.s32.totalorder %v177_v32, 0  ;;  %vm194_vm13 = vcmp.ne.s32.totalorder %v178_v36, 0  ;;  %v165_v45 = vsel %vm149_vm12, 16843009, %v482_v3 }
  0x44   :  { %vm318_vm10 = vmpackc.low %vm193_vm9, %vm192_vm8  ;;  %vm195_vm14 = vcmp.ne.s32.totalorder %v179_v37, 0  ;;  %v127_v47 = vpack.c.b8 %v126_v41, %v126_v41  ;;  %v104_v48 = vunpack.c.0.s8 %v94_v42  ;;  %v105_v49 = vunpack.c.1.s8 %v94_v42 }
  0x45   :  { %353 = vmatpush3.bf16.xpose.msk.msra.mxu0 %vm318_vm10, %v319_v22  ;;  %vm321_vm15 = vmpackc.low %vm195_vm14, %vm194_vm13  ;;  %v180_v50 = vunpack.c.0.s8 %v164_v44  ;;  %v181_v51 = vunpack.c.0.s8 %v165_v45  ;;  %vm150_vm0 = vnez %v125_v46  ;;  %v325_v56 = vpack.c.bf16 %v81_v53, %v80_v52  ;;  %v226_v52 = vld [vmem:[#allocation3] sm:$0xff]  ;;  %v227_v53 = vld [vmem:[#allocation3 + $0x8] sm:$0xff] }
  0x46   :  { %354 = vmatprep.subr.bf16.mxu0 %v480_v0  ;;  %vm151_vm1 = vnez %v127_v47  ;;  %v128_v54 = vpack.c.b16 %v104_v48, %v104_v48  ;;  %v130_v55 = vpack.c.b16 %v105_v49, %v105_v49  ;;  %v166_v57 = vsel %vm150_vm0, 16843009, %v482_v3  ;;  %v90_v49 = vld [vmem:[#allocation6 + $0x70] sm:$0xff] }
  0x47   :  { %vm196_vm2 = vcmp.ne.s32.totalorder %v180_v50, 0  ;;  %vm197_vm3 = vcmp.ne.s32.totalorder %v181_v51, 0  ;;  %v167_v58 = vsel %vm151_vm1, 16843009, %v482_v3  ;;  %v106_v62 = vunpack.c.2.s8 %v94_v42  ;;  %v91_v50 = vld [vmem:[#allocation6 + $0x78] sm:$0xff] }
  0x48   :  { %v129_v60 = vpack.c.b8 %v128_v54, %v128_v54  ;;  %v131_v61 = vpack.c.b8 %v130_v55, %v130_v55  ;;  %v107_v63 = vunpack.c.3.s8 %v94_v42  ;;  %vm324_vm4 = vmpackc.low %vm197_vm3, %vm196_vm2  ;;  %v182_v1 = vunpack.c.0.s8 %v166_v57  ;;  %v88_v42 = vld [vmem:[#allocation6 + $0x60] sm:$0xff] }
  0x49   :  { %v183_v2 = vunpack.c.0.s8 %v167_v58  ;;  %vm75_vm5 = vnez %v71_v59  ;;  %v132_v6 = vpack.c.b16 %v106_v62, %v106_v62  ;;  %v328_v9 = vpack.c.bf16 %v83_v5, %v82_v4 }
  0x4a   :  { %vm152_vm6 = vnez %v129_v60  ;;  %vm153_vm7 = vnez %v131_v61  ;;  %v134_v7 = vpack.c.b16 %v107_v63, %v107_v63  ;;  %v95_v8 = vsel %vm75_vm5, 16843009, %v482_v3 }
  0x4b   :  { %vm198_vm8 = vcmp.ne.s32.totalorder %v182_v1, 0  ;;  %vm199_vm9 = vcmp.ne.s32.totalorder %v183_v2, 0  ;;  %v168_v10 = vsel %vm152_vm6, 16843009, %v482_v3  ;;  %v169_v11 = vsel %vm153_vm7, 16843009, %v482_v3 }
  0x4c   :  { %v133_v12 = vpack.c.b8 %v132_v6, %v132_v6  ;;  %v135_v13 = vpack.c.b8 %v134_v7, %v134_v7  ;;  %v108_v14 = vunpack.c.0.s8 %v95_v8  ;;  %v109_v15 = vunpack.c.1.s8 %v95_v8  ;;  %vm327_vm10 = vmpackc.low %vm199_vm9, %vm198_vm8 }
  0x4d   :  { %355 = vmatpush3.bf16.xpose.msk.msra.mxu0 %vm321_vm15, %v322_v43  ;;  %v184_v16 = vunpack.c.0.s8 %v168_v10  ;;  %v185_v17 = vunpack.c.0.s8 %v169_v11  ;;  %v331_v22 = vpack.c.bf16 %v85_v19, %v84_v18  ;;  %v110_v27 = vunpack.c.2.s8 %v95_v8  ;;  %v89_v43 = vld [vmem:[#allocation6 + $0x68] sm:$0xff] }
  0x4e   :  { %356 = vmatprep.subr.bf16.mxu0 %v480_v0  ;;  %vm154_vm11 = vnez %v133_v12  ;;  %vm155_vm12 = vnez %v135_v13  ;;  %v136_v20 = vpack.c.b16 %v108_v14, %v108_v14  ;;  %v138_v21 = vpack.c.b16 %v109_v15, %v109_v15 }
  0x4f   :  { %vm200_vm13 = vcmp.ne.s32.totalorder %v184_v16, 0  ;;  %vm201_vm14 = vcmp.ne.s32.totalorder %v185_v17, 0  ;;  %v170_v23 = vsel %vm154_vm11, 16843009, %v482_v3  ;;  %v171_v24 = vsel %vm155_vm12, 16843009, %v482_v3 }
  0x50   :  { %v137_v25 = vpack.c.b8 %v136_v20, %v136_v20  ;;  %v139_v26 = vpack.c.b8 %v138_v21, %v138_v21  ;;  %v111_v28 = vunpack.c.3.s8 %v95_v8  ;;  %vm330_vm15 = vmpackc.low %vm201_vm14, %vm200_vm13  ;;  %v186_v29 = vunpack.c.0.s8 %v170_v23 }
  0x51   :  { %v187_v30 = vunpack.c.0.s8 %v171_v24  ;;  %v140_v31 = vpack.c.b16 %v110_v27, %v110_v27  ;;  %v334_v37 = vpack.c.bf16 %v87_v34, %v86_v33  ;;  %v337_v46 = vpack.c.bf16 %v89_v43, %v88_v42 }
  0x52   :  { %vm156_vm0 = vnez %v137_v25  ;;  %vm157_vm1 = vnez %v139_v26  ;;  %v142_v32 = vpack.c.b16 %v111_v28, %v111_v28  ;;  %vm202_vm2 = vcmp.ne.s32.totalorder %v186_v29, 0 }
  0x53   :  { %vm203_vm3 = vcmp.ne.s32.totalorder %v187_v30, 0  ;;  %v172_v35 = vsel %vm156_vm0, 16843009, %v482_v3  ;;  %v173_v36 = vsel %vm157_vm1, 16843009, %v482_v3  ;;  %v141_v38 = vpack.c.b8 %v140_v31, %v140_v31 }
  0x54   :  { %v143_v39 = vpack.c.b8 %v142_v32, %v142_v32  ;;  %v188_v40 = vunpack.c.0.s8 %v172_v35  ;;  %v189_v41 = vunpack.c.0.s8 %v173_v36  ;;  %v340_v51 = vpack.c.bf16 %v91_v50, %v90_v49 }
  0x55   :  { %357 = vmatpush3.bf16.xpose.msk.msra.mxu0 %vm324_vm4, %v325_v56  ;;  %vm333_vm4 = vmpackc.low %vm203_vm3, %vm202_vm2  ;;  %vm158_vm5 = vnez %v141_v38  ;;  %v228_v54 = vpack.c.bf16 %v227_v53, %v226_v52 }
  0x56   :  { %358 = vmatprep.subr.bf16.mxu0 %v480_v0  ;;  %vm159_vm6 = vnez %v143_v39  ;;  %vm204_vm7 = vcmp.ne.s32.totalorder %v188_v40, 0  ;;  %vm205_vm8 = vcmp.ne.s32.totalorder %v189_v41, 0  ;;  %v174_v44 = vsel %vm158_vm5, 16843009, %v482_v3 }
  0x57   :  { %v175_v45 = vsel %vm159_vm6, 16843009, %v482_v3  ;;  %vm336_vm9 = vmpackc.low %vm205_vm8, %vm204_vm7  ;;  %v190_v47 = vunpack.c.0.s8 %v174_v44  ;;  %v342_v3 = vld [vmem:[%s611_s3] ss:$0 sm:$0xff] }
  0x58   :  { %v191_v48 = vunpack.c.0.s8 %v175_v45 }
  0x5a   :  { %vm207_vm11 = vcmp.ne.s32.totalorder %v191_v48, 0 }
  0x5d   :  { %359 = vmatpush3.bf16.xpose.msk.msra.mxu0 %vm327_vm10, %v328_v9  ;;  %vm206_vm10 = vcmp.ne.s32.totalorder %v190_v47, 0 }
  0x5e   :  { %360 = vmatprep.subr.bf16.mxu0 %v480_v0  ;;  %vm339_vm12 = vmpackc.low %vm207_vm11, %vm206_vm10 }
  0x65   :  { %361 = vmatpush3.bf16.xpose.msk.msra.mxu0 %vm330_vm15, %v331_v22 }
  0x66   :  { %362 = vmatprep.subr.bf16.mxu0 %v480_v0 }
  0x6d   :  { %363 = vmatpush3.bf16.xpose.msk.msra.mxu0 %vm333_vm4, %v334_v37 }
  0x6e   :  { %364 = vmatprep.subr.bf16.mxu0 %v480_v0 }
  0x75   :  { %365 = vmatpush3.bf16.xpose.msk.msra.mxu0 %vm336_vm9, %v337_v46 }
  0x76   :  { %366 = vmatprep.subr.bf16.mxu0 %v480_v0 }
  0x7d   :  { %367 = vmatpush3.bf16.xpose.msk.msra.mxu0 %vm339_vm12, %v340_v51 }
  0x84   :  { %369 = vmatmul.mubr.bf16.vlgmr.msra.gmra.mrb[0].mxu0 %v228_v54 }
 0x157   :  { %v271_v55 = vpop.f32.mrb[0].mxu0 }
 0x158   :  { %v294_v56 = vadd.f32 %v342_v3, %v271_v55  ;;  %v370_v57 = vpop.f32.mrb[1].mxu0 }
 0x159   :  { %v274_v58 = vpop.f32.mrb[2].mxu0 }
 0x15a   :  { %v296_v0 = vmax.f32 %v294_v56, 0.0  ;;  %v295_v59 = vadd.f32 %v342_v3, %v274_v58  ;;  %v371_v60 = vpop.f32.mrb[3].mxu0 }
 0x15c   :  { %298 = vst [vmem:[#allocation9] sm:$0xff] %v296_v0  ;;  %v297_v61 = vmax.f32 %v295_v59, 0.0 }
 0x15e   :  { %299 = vst [vmem:[#allocation9 + $0x8] sm:$0xff] %v297_v61 }
 0x15f   :  { %458 = shalt.err (!%p455_p0)
}
 0x160   :  { %s459_s6 = scalar_lea.hbm %s612_s4, 256 }
 0x161   :  { %p460_p1 = scmp.ne.s32.totalorder %s612_s4, %s459_s6  ;;  %p463_p2 = scmp.lt.u32.totalorder %s459_s6, %s612_s4 }
 0x163   :  { %p465_p3 = pnand %p463_p2, %p460_p1 }
 0x165   :  { %468 = shalt.err (!%p465_p3)
}
 0x166   :  { %311 = dma.vmem_to_hbm [thread:$0]  %s306_s29, 256, %s612_s4, [#allocation5], %s477_s27, %s477_s27, %s478_s28  }
 0x167   :  { %473 = dma.done.wait [#allocation5], 256  }
 0x168   :  { %474 = vsyncadd [#allocation5], 4294967040 }
 0x169   :  { %315 = vsyncpa [#allocation4], 1 }
 0x16a   :  { %316 = vsyncpa [#allocation7], 1 }
 0x16b   :  { %317 = vsyncpa [#allocation5], 1 }

</bundles_post_ra>
